<compile_context>
chip_gen: v5e
topology: v5e:2x2
jax: 0.10.0
libtpu: 0.0.40
codegen_flags: <defaults>
</compile_context>

<pallas_src>
import functools

import jax
import jax.numpy as jnp
from jax.experimental import pallas as pl
from jax.experimental.pallas import tpu as pltpu


# --------------------------------------------------------------------------
# Small helpers
# --------------------------------------------------------------------------
def _round_up(x, m):
    return ((x + m - 1) // m) * m


def _pad2d(a, rows, cols):
    r, c = a.shape
    return jnp.pad(a, ((0, rows - r), (0, cols - c)))


def _vmem_limit_bytes():
    """Per-generation scoped-VMEM cap: ~48 MiB on v7x (64 MiB physical),
    ~96 MiB on v5e/v6e (128 MiB physical).  Also used as planning budget."""
    try:
        phys = int(pltpu.get_tpu_info().vmem_capacity_bytes)
    except Exception:  # pragma: no cover - conservative fallback
        phys = 64 * 1024 * 1024
    return min(phys * 3 // 4, 96 * 1024 * 1024)


def _choose_block_m(n, target=512):
    """Propagate row-tile.  Bigger tiles -> fewer ~0.35us grid steps on the
    HBM-bound propagate, but keep >=2 row tiles where possible (v7x megacore)
    and bound quadratic A_hat padding waste."""
    n128 = _round_up(n, 128)
    if n128 <= 256:
        return n128
    cands = [c for c in (1024, 768, 512, 384, 256, 128) if c <= target]
    half = n128 // 2
    for c in cands:                       # no padding beyond 128-alignment
        if c <= half and n128 % c == 0:
            return c
    for c in cands:                       # <=12.5% extra padded rows
        if c <= half and _round_up(n128, c) - n128 <= n128 // 8:
            return c
    return 128


def _pick_xw_block_m(n_pad, f_pad, h_out, vmem_limit):
    """Row tile for the X @ W kernel, decoupled from the propagate tile so a
    wide f_in never blows VMEM (X tile is (bm, f_pad) bf16, double-buffered)."""
    budget = vmem_limit // 2
    for bm in (512, 256, 128):
        if n_pad % bm:
            continue
        ws = 2 * bm * f_pad * 2 + 2 * f_pad * h_out * 2 + 2 * bm * h_out * 2
        if ws <= budget:
            return bm
    return 128  # TODO(synk): add a K grid axis for extremely wide f_in


# --------------------------------------------------------------------------
# Pallas kernels
# --------------------------------------------------------------------------
def _xw_kernel(x_ref, w_ref, o_ref):
    """Row-tiled dense matmul: (bm, F) @ (F, H) -> (bm, H), bf16 out."""
    o_ref[...] = jnp.dot(x_ref[...], w_ref[...],
                         preferred_element_type=jnp.float32).astype(o_ref.dtype)


def _prop_fuse_kernel(a_ref, xw_ref, b_ref, w2_ref, b2_ref, o_ref, *,
                      apply_relu):
    """Full-reduction propagate fused with a trailing matmul:
       out = act(A_strip @ XW + b) @ W2 + b2    (1-D grid over row strips)."""
    h = jnp.dot(a_ref[...], xw_ref[...],
                preferred_element_type=jnp.float32) + b_ref[...]
    if apply_relu:
        h = jnp.maximum(h, 0.0)
    out = jnp.dot(h.astype(w2_ref.dtype), w2_ref[...],
                  preferred_element_type=jnp.float32) + b2_ref[...]
    o_ref[...] = out.astype(o_ref.dtype)


def _prop_fuse_acc_kernel(a_ref, xw_ref, b_ref, w2_ref, b2_ref, o_ref,
                          acc_ref, *, apply_relu, block_k, xw_resident):
    """K-tiled propagate (fp32 accumulator) fused with a trailing matmul."""
    k = pl.program_id(1)

    @pl.when(k == 0)
    def _():
        acc_ref[...] = jnp.zeros_like(acc_ref)

    if xw_resident:
        start = pl.multiple_of(k * block_k, block_k)
        xw_blk = xw_ref[pl.ds(start, block_k), :]
    else:
        xw_blk = xw_ref[...]
    acc_ref[...] += jnp.dot(a_ref[...], xw_blk,
                            preferred_element_type=jnp.float32)

    @pl.when(k == pl.num_programs(1) - 1)
    def _():
        h = acc_ref[...] + b_ref[...]
        if apply_relu:
            h = jnp.maximum(h, 0.0)
        out = jnp.dot(h.astype(w2_ref.dtype), w2_ref[...],
                      preferred_element_type=jnp.float32) + b2_ref[...]
        o_ref[...] = out.astype(o_ref.dtype)


# --------------------------------------------------------------------------
# pallas_call wrappers
# --------------------------------------------------------------------------
def xw_matmul(x, w, *, vmem_limit):
    """X @ W' (BN pre-folded into W'), row-tiled, bf16 output."""
    n_pad, f_pad = x.shape
    h_out = w.shape[1]
    block_m = _pick_xw_block_m(n_pad, f_pad, h_out, vmem_limit)
    cost = pl.CostEstimate(
        flops=2 * n_pad * f_pad * h_out, transcendentals=0,
        bytes_accessed=n_pad * f_pad * 2 + f_pad * h_out * 2 + n_pad * h_out * 2)
    return pl.pallas_call(
        _xw_kernel,
        out_shape=jax.ShapeDtypeStruct((n_pad, h_out), jnp.bfloat16),
        grid=(n_pad // block_m,),
        in_specs=[pl.BlockSpec((block_m, f_pad), lambda i: (i, 0)),
                  pl.BlockSpec((f_pad, h_out), lambda i: (0, 0))],
        out_specs=pl.BlockSpec((block_m, h_out), lambda i: (i, 0)),
        compiler_params=pltpu.CompilerParams(
            dimension_semantics=("parallel",),
            vmem_limit_bytes=vmem_limit),
        cost_estimate=cost,
    )(x, w)


def gcn_propagate_fused(a_hat, xw, b, w2, b2, *, apply_relu, out_dtype,
                        block_m, vmem_limit, force_k_tiled=False,
                        force_stream_xw=False):
    """out = act(A_hat @ XW + b) @ W2 + b2, choosing the cheapest tiling that
    fits the per-generation VMEM budget."""
    n_pad = a_hat.shape[0]
    h_in = xw.shape[1]
    o_out = w2.shape[1]
    out_itemsize = 2 if out_dtype == jnp.bfloat16 else 4
    budget = int(vmem_limit * 0.85)

    # Conservative working-set estimates (assume 2x buffering everywhere).
    bytes_w2 = 2 * int(w2.size) * int(w2.dtype.itemsize)
    bytes_bias = 2 * (int(b.size) * 4 + int(b2.size) * 4)
    bytes_out = 2 * block_m * o_out * out_itemsize
    bytes_xw_res = 2 * n_pad * h_in * 2
    bytes_a_strip = 2 * block_m * n_pad * 2

    cost = pl.CostEstimate(
        flops=2 * n_pad * n_pad * h_in + 2 * n_pad * h_in * o_out,
        transcendentals=0,
        bytes_accessed=(n_pad * n_pad * 2 + n_pad * h_in * 2
                        + n_pad * o_out * out_itemsize + int(w2.size) * 2))

    full_ws = bytes_a_strip + bytes_xw_res + bytes_out + bytes_w2 + bytes_bias
    if not force_k_tiled and full_ws <= budget:
        # Fast path: 1-D grid over row strips, whole reduction per step,
        # XW / W2 VMEM-resident, no accumulator scratch, no pl.when.
        kernel = functools.partial(_prop_fuse_kernel, apply_relu=apply_relu)
        return pl.pallas_call(
            kernel,
            out_shape=jax.ShapeDtypeStruct((n_pad, o_out), out_dtype),
            grid=(n_pad // block_m,),
            in_specs=[pl.BlockSpec((block_m, n_pad), lambda i: (i, 0)),
                      pl.BlockSpec((n_pad, h_in), lambda i: (0, 0)),
                      pl.BlockSpec((1, h_in), lambda i: (0, 0)),
                      pl.BlockSpec((h_in, o_out), lambda i: (0, 0)),
                      pl.BlockSpec((1, o_out), lambda i: (0, 0))],
            out_specs=pl.BlockSpec((block_m, o_out), lambda i: (i, 0)),
            compiler_params=pltpu.CompilerParams(
                dimension_semantics=("parallel",),
                vmem_limit_bytes=vmem_limit),
            cost_estimate=cost,
        )(a_hat, xw, b, w2, b2)

    # Large-graph path: tile the reduction, fp32 accumulator, pl.when
    # init/finalize.  Keep XW resident in VMEM when it fits (sliced per k).
    block_k = block_m
    acc_bytes = block_m * h_in * 4
    bytes_a_tile = 2 * block_m * block_k * 2
    resident_ws = (bytes_a_tile + bytes_xw_res + bytes_out + bytes_w2
                   + bytes_bias + acc_bytes)
    xw_resident = (not force_stream_xw) and resident_ws <= budget
    if xw_resident:
        xw_spec = pl.BlockSpec((n_pad, h_in), lambda i, k: (0, 0))
    else:
        xw_spec = pl.BlockSpec((block_k, h_in), lambda i, k: (k, 0))

    kernel = functools.partial(_prop_fuse_acc_kernel, apply_relu=apply_relu,
                               block_k=block_k, xw_resident=xw_resident)
    return pl.pallas_call(
        kernel,
        out_shape=jax.ShapeDtypeStruct((n_pad, o_out), out_dtype),
        grid_spec=pltpu.PrefetchScalarGridSpec(
            num_scalar_prefetch=0,
            grid=(n_pad // block_m, n_pad // block_k),
            in_specs=[pl.BlockSpec((block_m, block_k), lambda i, k: (i, k)),
                      xw_spec,
                      pl.BlockSpec((1, h_in), lambda i, k: (0, 0)),
                      pl.BlockSpec((h_in, o_out), lambda i, k: (0, 0)),
                      pl.BlockSpec((1, o_out), lambda i, k: (0, 0))],
            out_specs=pl.BlockSpec((block_m, o_out), lambda i, k: (i, 0)),
            scratch_shapes=[pltpu.VMEM((block_m, h_in), jnp.float32)]),
        compiler_params=pltpu.CompilerParams(
            dimension_semantics=("parallel", "arbitrary"),
            vmem_limit_bytes=vmem_limit),
        cost_estimate=cost,
    )(a_hat, xw, b, w2, b2)


# --------------------------------------------------------------------------
# Glue: GCN-normalized dense adjacency (padded, bf16) from edge_index/weight
# --------------------------------------------------------------------------
def build_norm_adj(edge_index, edge_weight, num_nodes, n_pad,
                   dtype=jnp.bfloat16):
    """D^-1/2 (A + I) D^-1/2, built directly at (n_pad, n_pad).

    Padded rows/cols have zero degree -> stay exactly zero, so they never
    contaminate real rows.  (Padded OUTPUT rows of the propagate become
    relu(bias) -- wasted work only; they are sliced off at the end.)
    TODO(synk): if edge_index already contains self-loops they are
    double-counted vs. PyG add_self_loops.
    """
    src, dst = edge_index[0], edge_index[1]
    if edge_weight is None:
        edge_weight = jnp.ones(src.shape, dtype=jnp.float32)
    a = jnp.zeros((n_pad, n_pad), jnp.float32)
    a = a.at[src, dst].add(edge_weight)
    diag = jnp.arange(num_nodes)
    a = a.at[diag, diag].add(1.0)                       # self loops
    deg = a.sum(axis=1)
    d_inv_sqrt = jnp.where(deg > 0, jax.lax.rsqrt(deg), 0.0)
    return (d_inv_sqrt[:, None] * a * d_inv_sqrt[None, :]).astype(dtype)


def _fold_bn(lp, *, use_bn, eps):
    """Fold eval-mode BatchNorm into W / b (per-output-column affine)."""
    w, b = lp["w"], lp["b"]
    if not use_bn:
        return w, b
    scale = lp["gamma"] * jax.lax.rsqrt(lp["var"] + eps)   # (1, fan_out)
    return w * scale, (b - lp["mean"]) * scale + lp["beta"]


# --------------------------------------------------------------------------
# Parameter construction (deterministic) + COSTA forward
# --------------------------------------------------------------------------
def init_costa_params(key, input_dim, hidden, output_dim, layer_num=2):
    params = {"layers": []}
    dims = [input_dim] + [hidden] * layer_num
    for li in range(layer_num):
        key, kw = jax.random.split(key)
        fan_in, fan_out = dims[li], dims[li + 1]
        w = jax.random.uniform(kw, (fan_in, fan_out), jnp.float32,
                               -1.0 / jnp.sqrt(fan_in), 1.0 / jnp.sqrt(fan_in))
        params["layers"].append({
            "w": w,
            "b": jnp.zeros((1, fan_out), jnp.float32),
            "gamma": jnp.ones((1, fan_out), jnp.float32),
            "beta": jnp.zeros((1, fan_out), jnp.float32),
            "mean": jnp.zeros((1, fan_out), jnp.float32),
            "var": jnp.ones((1, fan_out), jnp.float32),
        })
    key, kc = jax.random.split(key)
    wc = jax.random.uniform(kc, (hidden, output_dim), jnp.float32,
                            -1.0 / jnp.sqrt(hidden), 1.0 / jnp.sqrt(hidden))
    params["classifier"] = {"w": wc, "b": jnp.zeros((1, output_dim), jnp.float32)}
    return params


def costa_forward(params, x, edge_index, edge_weight=None, *, use_bn=True,
                  last_activation=False, eps=1e-5, block_m=None, a_hat=None,
                  force_k_tiled=False, force_stream_xw=False):
    """out = classifier(encoder(x, edge_index, edge_weight)), eval-mode."""
    n, f_in = x.shape
    layers = params["layers"]
    n_layers = len(layers)
    out_dim = params["classifier"]["w"].shape[1]

    vmem_limit = _vmem_limit_bytes()
    if block_m is None:
        block_m = _choose_block_m(n)
    n_pad = _round_up(n, block_m)
    f_pad = _round_up(f_in, 128)
    h_pads = [_round_up(lp["w"].shape[1], 128) for lp in layers]
    o_pad = _round_up(out_dim, 128)

    if a_hat is None:
        a_hat = build_norm_adj(edge_index, edge_weight, n, n_pad)

    # Fold eval-mode BN into W'/b' and zero-pad (padded columns stay zero).
    folded = []
    in_pads = [f_pad] + h_pads[:-1]
    for li, lp in enumerate(layers):
        w_eff, b_eff = _fold_bn(lp, use_bn=use_bn, eps=eps)
        w_p = _pad2d(w_eff, in_pads[li], h_pads[li]).astype(jnp.bfloat16)
        b_p = _pad2d(b_eff, 1, h_pads[li]).astype(jnp.float32)
        folded.append((w_p, b_p))
    cp = params["classifier"]
    wc_p = _pad2d(cp["w"], h_pads[-1], o_pad).astype(jnp.bfloat16)
    bc_p = _pad2d(cp["b"], 1, o_pad).astype(jnp.float32)

    # Padded node features.
    x_p = jnp.zeros((n_pad, f_pad), jnp.bfloat16).at[:n, :f_in].set(
        x.astype(jnp.bfloat16))

    # Layer 1's XW in its own kernel (f_in may be >> hidden); every subsequent
    # XW is produced by the previous propagate's fused trailing matmul.
    xw = xw_matmul(x_p, folded[0][0], vmem_limit=vmem_limit)

    out = None
    for li in range(n_layers):
        is_last = li == n_layers - 1
        b_i = folded[li][1]
        if not is_last:
            # dropout: identity at inference time (eval / frozen forward).
            w_next = folded[li + 1][0]
            zero_b = jnp.zeros((1, w_next.shape[1]), jnp.float32)
            xw = gcn_propagate_fused(
                a_hat, xw, b_i, w_next, zero_b, apply_relu=True,
                out_dtype=jnp.bfloat16, block_m=block_m, vmem_limit=vmem_limit,
                force_k_tiled=force_k_tiled, force_stream_xw=force_stream_xw)
        else:
            out = gcn_propagate_fused(
                a_hat, xw, b_i, wc_p, bc_p, apply_relu=last_activation,
                out_dtype=jnp.float32, block_m=block_m, vmem_limit=vmem_limit,
                force_k_tiled=force_k_tiled, force_stream_xw=force_stream_xw)

    return out[:n, :out_dim]


# --------------------------------------------------------------------------
# Pure-JAX fp32 reference (same semantics, no padding / no bf16)
# --------------------------------------------------------------------------
def _reference_forward(params, x, edge_index, edge_weight=None, *, use_bn=True,
                       last_activation=False, eps=1e-5):
    n = x.shape[0]
    a = build_norm_adj(edge_index, edge_weight, n, n, dtype=jnp.float32)
    h = x
    n_layers = len(params["layers"])
    for li, lp in enumerate(params["layers"]):
        w_eff, b_eff = _fold_bn(lp, use_bn=use_bn, eps=eps)
        h = a @ (h @ w_eff) + b_eff
        if li < n_layers - 1 or last_activation:
            h = jnp.maximum(h, 0.0)
    cp = params["classifier"]
    return h @ cp["w"] + cp["b"]


# --------------------------------------------------------------------------
# Demo
# --------------------------------------------------------------------------
if __name__ == "__main__":
    key = jax.random.PRNGKey(0)

    num_nodes = 16
    input_dim = 32
    hidden = 32
    output_dim = 8
    num_edges = 40

    key, kx, ke, kw = jax.random.split(key, 4)
    x = jax.random.normal(kx, (num_nodes, input_dim), jnp.float32)
    edge_index = jax.random.randint(ke, (2, num_edges), 0, num_nodes,
                                    dtype=jnp.int32)
    edge_weight = jax.random.uniform(kw, (num_edges,), jnp.float32, 0.5, 1.5)

    params = init_costa_params(key, input_dim, hidden, output_dim, layer_num=2)

    # Default path (full-reduction fast path at this size).
    out = costa_forward(params, x, edge_index, edge_weight)
    jax.block_until_ready(out)
    assert out.shape == (num_nodes, output_dim)

    # Exercise the large-graph code paths too (K-tiled accumulator kernel,
    # resident and streamed XW variants).
    out_k = costa_forward(params, x, edge_index, edge_weight,
                          force_k_tiled=True)
    out_ks = costa_forward(params, x, edge_index, edge_weight,
                           force_k_tiled=True, force_stream_xw=True)
    jax.block_until_ready((out_k, out_ks))

    ref = _reference_forward(params, x, edge_index, edge_weight)
    assert jnp.allclose(out, ref, atol=5e-2, rtol=5e-2)
    assert jnp.allclose(out_k, ref, atol=5e-2, rtol=5e-2)
    assert jnp.allclose(out_ks, ref, atol=5e-2, rtol=5e-2)

    print("KERNEL_OK")
</pallas_src>

<mosaic_0001>
module attributes {stable_mosaic.version = 11 : i64} {
  func.func @_xw_kernel(%arg0: i32, %arg1: memref<128x128xbf16, #tpu.memory_space<vmem>>, %arg2: memref<128x128xbf16, #tpu.memory_space<vmem>>, %arg3: memref<128x128xbf16, #tpu.memory_space<vmem>>) attributes {dimension_semantics = [#tpu.dimension_semantics<parallel>], iteration_bounds = array<i64: 1>, scalar_prefetch = 0 : i64, scratch_operands = 0 : i64, tpu.core_type = #tpu.core_type<tc>, window_params = [{transform_indices = @transform_0, window_bounds = array<i64: 128, 128>}, {pipeline_mode = #tpu.pipeline_mode<synchronous>, transform_indices = @transform_1, window_bounds = array<i64: 128, 128>}, {transform_indices = @transform_2, window_bounds = array<i64: 128, 128>}]} {
    %c0 = arith.constant 0 : index
    %c0_0 = arith.constant 0 : index
    %0 = vector.load %arg1[%c0, %c0_0] : memref<128x128xbf16, #tpu.memory_space<vmem>>, vector<128x128xbf16>
    %c0_1 = arith.constant 0 : index
    %c0_2 = arith.constant 0 : index
    %1 = vector.load %arg2[%c0_1, %c0_2] : memref<128x128xbf16, #tpu.memory_space<vmem>>, vector<128x128xbf16>
    %cst = arith.constant dense<0.000000e+00> : vector<128x128xf32>
    %2 = tpu.matmul %0, %1, %cst {dimension_numbers = #tpu.dot_dimension_numbers<[1], [0], [0], [1], [0, 0, 1, 1], [], []>} : vector<128x128xbf16>, vector<128x128xbf16>, vector<128x128xf32> -> vector<128x128xf32>
    %3 = arith.truncf %2 : vector<128x128xf32> to vector<128x128xbf16>
    %c0_3 = arith.constant 0 : index
    %c0_4 = arith.constant 0 : index
    %4 = vector.load %arg3[%c0_3, %c0_4] : memref<128x128xbf16, #tpu.memory_space<vmem>>, vector<128x128xbf16>
    tpu.vector_store %arg3[%c0_3, %c0_4], %3 {strides = array<i32>} : memref<128x128xbf16, #tpu.memory_space<vmem>>, vector<128x128xbf16>,
    return
  }
  func.func @transform_0(%arg0: i32) -> (i32, i32) {
    %c0_i32 = arith.constant 0 : i32
    %c0_i32_0 = arith.constant 0 : i32
    return %arg0, %c0_i32 : i32, i32
  }
  func.func @transform_1(%arg0: i32) -> (i32, i32) {
    %c0_i32 = arith.constant 0 : i32
    %c0_i32_0 = arith.constant 0 : i32
    %c0_i32_1 = arith.constant 0 : i32
    return %c0_i32, %c0_i32_0 : i32, i32
  }
  func.func @transform_2(%arg0: i32) -> (i32, i32) {
    %c0_i32 = arith.constant 0 : i32
    %c0_i32_0 = arith.constant 0 : i32
    return %arg0, %c0_i32 : i32, i32
  }
}

</mosaic_0001>

<bundles_post_ra>
// kernel: tpu_custom_call.1
= control target key start
LH: loop header
LB: loop body
LE: loop exit
PB: predicated region body
PF: predicated region fallthrough
CT: control target
= control target key end

     0   :  { %7 = vsyncpa [#allocation3], 0  ;;  %s545_s0 = inlined_call_operand.hbm [shape: bf16[128,128], index: 0, kind: input, shape index: {}]   ;;  %s546_s1 = inlined_call_operand.hbm [shape: bf16[128,128], index: 1, kind: input, shape index: {}]   ;;  %s547_s2 = inlined_call_operand.hbm [shape: bf16[128,128], index: 2, kind: output, shape index: {}]  }
   0x1   :  { %8 = vsyncpa [#allocation6], 0 }
   0x2   :  { %9 = vsyncpa [#allocation4], 0  ;;  %s14_s11 = sshll.u32 %s545_s0, 4  ;;  %s507_s12 = smov [#allocation2]   ;;  %s15_s11 = int_to_ptr.hbm [resolvable:$true] %s14_s11 }
   0x3   :  { %s16_s13 = sshll.u32 %s507_s12, 4  ;;  %s27_s16 = sshll.u32 %s546_s1, 4  ;;  %s17_s13 = int_to_ptr.vmem [resolvable:$true] %s16_s13  ;;  %s28_s16 = int_to_ptr.hbm [resolvable:$true] %s27_s16 }
   0x4   :  { %s508_s17 = smov 64   ;;  %s509_s18 = smov 4  }
   0x5   :  { %22 = dma.hbm_to_vmem [thread:$0]  %s15_s11, 1024, %s17_s13, [#allocation3], %s508_s17, %s508_s17, %s509_s18  }
   0x6   :  { %s510_s19 = smov [#allocation5]  }
   0x7   :  { %s29_s20 = sshll.u32 %s510_s19, 4  ;;  %s30_s20 = int_to_ptr.vmem [resolvable:$true] %s29_s20 }
   0x8   :  { %35 = dma.hbm_to_vmem [thread:$0]  %s28_s16, 1024, %s30_s20, [#allocation6], %s508_s17, %s508_s17, %s509_s18  }
   0x9   :  { %501 = dma.done.wait [#allocation3], 1024  }
   0xa   :  { %502 = vsyncadd [#allocation3], 4294966272 }
   0xb   :  { %503 = dma.done.wait [#allocation6], 1024  }
   0xc   :  { %504 = vsyncadd [#allocation6], 4294966272  ;;  %v352_v0 = vld [vmem:[#allocation5 + $0x38] sm:$0xff]  ;;  %v351_v1 = vld [vmem:[#allocation5 + $0x30] sm:$0xff]  ;;  %s511_s0 = smov [#allocation7]   ;;  %s259_s23 = sshll.u32 %s547_s2, 4  ;;  %s260_s23 = int_to_ptr.hbm [resolvable:$true] %s259_s23 }
   0xd   :  { %172 = vmatpush.bf16.msra.mxu0 %v352_v0  ;;  %400 = vmatpush.bf16.msra.mxu1 %v352_v0  ;;  %v350_v2 = vld [vmem:[#allocation5 + $0x28] sm:$0xff]  ;;  %v349_v3 = vld [vmem:[#allocation5 + $0x20] sm:$0xff]  ;;  %v348_v4 = vld [vmem:[#allocation5 + $0x18] sm:$0xff]  ;;  %s257_s1 = sshll.u32 %s511_s0, 4  ;;  %s258_s1 = int_to_ptr.vmem [resolvable:$true] %s257_s1 }
   0xe   :  { %401 = vmatpush.bf16.msra.mxu2 %v352_v0  ;;  %402 = vmatpush.bf16.msra.mxu3 %v352_v0  ;;  %v347_v5 = vld [vmem:[#allocation5 + $0x10] sm:$0xff]  ;;  %v346_v6 = vld [vmem:[#allocation5 + $0x8] sm:$0xff]  ;;  %v345_v7 = vld [vmem:[#allocation5] sm:$0xff] }
   0xf   :  { %v337_v8 = vld [vmem:[#allocation2] sm:$0xff]  ;;  %v339_v9 = vld [vmem:[#allocation2 + $0x10] sm:$0xff]  ;;  %v338_v12 = vld [vmem:[#allocation2 + $0x8] sm:$0xff] }
  0x10   :  { %v341_v10 = vld [vmem:[#allocation2 + $0x20] sm:$0xff]  ;;  %v343_v11 = vld [vmem:[#allocation2 + $0x30] sm:$0xff]  ;;  %v340_v13 = vld [vmem:[#allocation2 + $0x18] sm:$0xff] }
  0x11   :  { %173 = vmatpush.bf16.msra.mxu0 %v351_v1  ;;  %403 = vmatpush.bf16.msra.mxu1 %v351_v1  ;;  %v342_v14 = vld [vmem:[#allocation2 + $0x28] sm:$0xff]  ;;  %v344_v15 = vld [vmem:[#allocation2 + $0x38] sm:$0xff] }
  0x12   :  { %404 = vmatpush.bf16.msra.mxu2 %v351_v1  ;;  %405 = vmatpush.bf16.msra.mxu3 %v351_v1 }
  0x15   :  { %174 = vmatpush.bf16.msra.mxu0 %v350_v2  ;;  %406 = vmatpush.bf16.msra.mxu1 %v350_v2 }
  0x16   :  { %407 = vmatpush.bf16.msra.mxu2 %v350_v2  ;;  %408 = vmatpush.bf16.msra.mxu3 %v350_v2 }
  0x19   :  { %175 = vmatpush.bf16.msra.mxu0 %v349_v3  ;;  %409 = vmatpush.bf16.msra.mxu1 %v349_v3 }
  0x1a   :  { %410 = vmatpush.bf16.msra.mxu2 %v349_v3  ;;  %411 = vmatpush.bf16.msra.mxu3 %v349_v3 }
  0x1d   :  { %176 = vmatpush.bf16.msra.mxu0 %v348_v4  ;;  %412 = vmatpush.bf16.msra.mxu1 %v348_v4 }
  0x1e   :  { %413 = vmatpush.bf16.msra.mxu2 %v348_v4  ;;  %414 = vmatpush.bf16.msra.mxu3 %v348_v4 }
  0x21   :  { %177 = vmatpush.bf16.msra.mxu0 %v347_v5  ;;  %415 = vmatpush.bf16.msra.mxu1 %v347_v5 }
  0x22   :  { %416 = vmatpush.bf16.msra.mxu2 %v347_v5  ;;  %417 = vmatpush.bf16.msra.mxu3 %v347_v5 }
  0x25   :  { %178 = vmatpush.bf16.msra.mxu0 %v346_v6  ;;  %418 = vmatpush.bf16.msra.mxu1 %v346_v6 }
  0x26   :  { %419 = vmatpush.bf16.msra.mxu2 %v346_v6  ;;  %420 = vmatpush.bf16.msra.mxu3 %v346_v6 }
  0x29   :  { %179 = vmatpush.bf16.msra.mxu0 %v345_v7  ;;  %421 = vmatpush.bf16.msra.mxu1 %v345_v7 }
  0x2a   :  { %422 = vmatpush.bf16.msra.mxu2 %v345_v7  ;;  %423 = vmatpush.bf16.msra.mxu3 %v345_v7 }
  0x2c   :  { %180 = vmatmul.bf16.vlgmr.msra.gmra.mxu0 %v337_v8  ;;  %190 = vmatmul.bf16.vlgmr.msra.gmra.mxu1 %v339_v9 }
  0x2d   :  { %200 = vmatmul.bf16.vlgmr.msra.gmra.mxu2 %v341_v10  ;;  %210 = vmatmul.bf16.vlgmr.msra.gmra.mxu3 %v343_v11 }
  0x3c   :  { %185 = vmatmul.bf16.gmra.mxu0 %v338_v12  ;;  %195 = vmatmul.bf16.gmra.mxu1 %v340_v13 }
  0x3d   :  { %205 = vmatmul.bf16.gmra.mxu2 %v342_v14  ;;  %215 = vmatmul.bf16.gmra.mxu3 %v344_v15 }
  0xa9   :  { %v181_v16 = vpop.f32.mrf.mxu0  ;;  %v191_v17 = vpop.f32.mrf.mxu1 }
  0xb0   :  { %v201_v18 = vpop.f32.mrf.mxu2  ;;  %v211_v19 = vpop.f32.mrf.mxu3 }
  0xb1   :  { %v183_v20 = vpop.f32.mrf.mxu0  ;;  %v193_v21 = vpop.f32.mrf.mxu1 }
  0xb2   :  { %v356_v22 = vpack.c.bf16 %v183_v20, %v181_v16  ;;  %v366_v23 = vpack.c.bf16 %v193_v21, %v191_v17 }
  0xb4   :  { %357 = vst [vmem:[#allocation7] sm:$0xff] %v356_v22  }
  0xb5   :  { %394 = vst [vmem:[#allocation7 + $0x10] sm:$0xff] %v366_v23  }
  0xb8   :  { %v203_v24 = vpop.f32.mrf.mxu2  ;;  %v213_v25 = vpop.f32.mrf.mxu3 }
  0xb9   :  { %v376_v26 = vpack.c.bf16 %v203_v24, %v201_v18  ;;  %v386_v27 = vpack.c.bf16 %v213_v25, %v211_v19  ;;  %v186_v28 = vpop.f32.mrf.mxu0  ;;  %v196_v29 = vpop.f32.mrf.mxu1 }
  0xbb   :  { %396 = vst [vmem:[#allocation7 + $0x20] sm:$0xff] %v376_v26  }
  0xbc   :  { %398 = vst [vmem:[#allocation7 + $0x30] sm:$0xff] %v386_v27  }
  0xc0   :  { %v206_v30 = vpop.f32.mrf.mxu2  ;;  %v216_v31 = vpop.f32.mrf.mxu3 }
  0xc1   :  { %v188_v32 = vpop.f32.mrf.mxu0  ;;  %v198_v33 = vpop.f32.mrf.mxu1 }
  0xc2   :  { %v361_v34 = vpack.c.bf16 %v188_v32, %v186_v28  ;;  %v371_v35 = vpack.c.bf16 %v198_v33, %v196_v29 }
  0xc4   :  { %393 = vst [vmem:[#allocation7 + $0x8] sm:$0xff] %v361_v34  }
  0xc5   :  { %395 = vst [vmem:[#allocation7 + $0x18] sm:$0xff] %v371_v35  }
  0xc8   :  { %v208_v36 = vpop.f32.mrf.mxu2  ;;  %v218_v37 = vpop.f32.mrf.mxu3 }
  0xc9   :  { %v381_v38 = vpack.c.bf16 %v208_v36, %v206_v30  ;;  %v391_v39 = vpack.c.bf16 %v218_v37, %v216_v31 }
  0xcb   :  { %397 = vst [vmem:[#allocation7 + $0x28] sm:$0xff] %v381_v38  }
  0xcc   :  { %399 = vst [vmem:[#allocation7 + $0x38] sm:$0xff] %v391_v39  }
  0xcd   :  { %265 = dma.vmem_to_hbm [thread:$0]  %s258_s1, 1024, %s260_s23, [#allocation4], %s508_s17, %s508_s17, %s509_s18  }
  0xce   :  { %505 = dma.done.wait [#allocation4], 1024  }
  0xcf   :  { %506 = vsyncadd [#allocation4], 4294966272 }
  0xd0   :  { %270 = vsyncpa [#allocation3], 1 }
  0xd1   :  { %271 = vsyncpa [#allocation6], 1 }
  0xd2   :  { %272 = vsyncpa [#allocation4], 1 }

</bundles_post_ra>
